<compile_context>
chip_gen: v6e
topology: v6e:2x2x1
jax: 0.10.0
libtpu: 0.0.40
codegen_flags: <defaults>
</compile_context>

<pallas_src>
import jax
import jax.numpy as jnp
from jax.experimental import pallas as pl
from jax.experimental.pallas import tpu as pltpu


def _round_up(x, m):
    return (x + m - 1) // m * m


def _make_critic_kernel(dp, hp):
    """Feature-major fused MLP + value head.

    Packed weight buffer rows:
      [0,   hp)        : W1^T  (hp, dp)   in lanes [0, dp)
      [hp,  2*hp)      : W2^T  (hp, hp)   in lanes [0, hp)
      [2*hp, 2*hp+1)   : w3 row (1, hp)   in lanes [0, hp)
    Bias buffer (f32, (hp, 3)): col0 = b1, col1 = b2, [0, 2] = b3.
    """

    def kernel(xt_ref, w_ref, bias_ref, out_ref):
        xt = xt_ref[...]                              # (dp, TILE_B), compute dtype
        cdt = xt.dtype

        w1t = w_ref[0:hp, 0:dp]                       # (hp, dp)
        w2t = w_ref[hp:2 * hp, 0:hp]                  # (hp, hp)
        w3 = w_ref[2 * hp:2 * hp + 1, 0:hp]           # (1, hp)
        b1 = bias_ref[:, 0:1]                         # (hp, 1) f32
        b2 = bias_ref[:, 1:2]                         # (hp, 1) f32
        b3 = bias_ref[0:1, 2:3]                       # (1, 1)  f32

        # base: Linear -> ReLU -> Linear -> ReLU (feature-major).
        # MXU accumulates in f32; bias-add / ReLU run in f32 on the VPU.
        h1 = jnp.dot(w1t, xt, preferred_element_type=jnp.float32)   # (hp, TILE_B)
        h1 = jnp.maximum(h1 + b1, 0.0).astype(cdt)
        h2 = jnp.dot(w2t, h1, preferred_element_type=jnp.float32)   # (hp, TILE_B)
        h2 = jnp.maximum(h2 + b2, 0.0).astype(cdt)

        # v_out: (1, hp) @ (hp, TILE_B) -> lane-dense (1, TILE_B); no transpose.
        v = jnp.dot(w3, h2, preferred_element_type=jnp.float32)
        out_ref[...] = (v + b3).astype(out_ref.dtype)

    return kernel


def _pack_params(params, d_in, h, dp, hp, compute_dtype):
    """Zero-pad & pack [W1^T | W2^T | w3] (compute dtype) + f32 bias buffer."""
    w1, b1, w2, b2, w3, b3 = params
    width = max(dp, hp)
    rows = 2 * hp + 8                                  # w3 segment padded to 8 rows
    wbuf = jnp.zeros((rows, width), compute_dtype)
    wbuf = wbuf.at[0:h, 0:d_in].set(jnp.asarray(w1).T.astype(compute_dtype))
    wbuf = wbuf.at[hp:hp + h, 0:h].set(jnp.asarray(w2).T.astype(compute_dtype))
    wbuf = wbuf.at[2 * hp, 0:h].set(jnp.asarray(w3).reshape(-1).astype(compute_dtype))

    bias = jnp.zeros((hp, 3), jnp.float32)             # biases stay f32 (never bf16)
    bias = bias.at[0:h, 0].set(jnp.asarray(b1, jnp.float32).reshape(-1))
    bias = bias.at[0:h, 1].set(jnp.asarray(b2, jnp.float32).reshape(-1))
    bias = bias.at[0, 2].set(jnp.asarray(b3, jnp.float32).reshape(-1)[0])
    return wbuf, bias


def _choose_tiling(b, tile_b):
    """Pick a batch tile (multiple of 128); prefer an even grid count (v7x)."""
    tile_b = max(128, _round_up(tile_b, 128))
    b128 = _round_up(b, 128)
    tile_b = min(tile_b, b128)
    b_pad = _round_up(b, tile_b)
    n_tiles = b_pad // tile_b
    if n_tiles > 1 and n_tiles % 2 == 1:
        # Shrink the tile to get an even number of grid steps iff it adds no padding.
        alt_tile = _round_up(-(-b // (n_tiles + 1)), 128)
        alt_pad = _round_up(b, alt_tile)
        if alt_tile >= 128 and alt_pad <= b_pad and (alt_pad // alt_tile) % 2 == 0:
            tile_b, b_pad = alt_tile, alt_pad
            n_tiles = b_pad // tile_b
    return tile_b, b_pad, n_tiles


def critic_forward(x, params, output_shape=(-1,), *, tile_b=512,
                   compute_dtype=jnp.float32):
    """Fused Critic forward. x: (B, D_in); params: (w1,b1,w2,b2,w3,b3).

    compute_dtype: use jnp.bfloat16 on v6e/v7x (f32 accumulation + f32 biases
    are kept regardless); keep jnp.float32 on v5e.
    """
    w1 = params[0]
    b, d_in = x.shape
    h = w1.shape[1]

    dp = _round_up(d_in, 8)            # sublane alignment of the feature axis
    hp = _round_up(h, 128)             # full 128-lane hidden dim
    tile_b, b_pad, n_tiles = _choose_tiling(b, tile_b)

    # x is fed feature-major (dp, b_pad): pad + cast + transpose in ONE fused copy.
    # Zero padding is exact through Linear + ReLU (zero weight rows/cols, zero bias).
    if d_in == dp and b == b_pad:
        xt = x.astype(compute_dtype).T
    else:
        xt = jnp.zeros((dp, b_pad), compute_dtype).at[:d_in, :b].set(
            x.astype(compute_dtype).T)

    wbuf, bias = _pack_params(params, d_in, h, dp, hp, compute_dtype)
    rows, width = wbuf.shape

    kernel = _make_critic_kernel(dp, hp)
    itemsize = jnp.dtype(compute_dtype).itemsize
    cost = pl.CostEstimate(
        flops=2 * b_pad * (d_in * h + h * h + h),
        transcendentals=0,
        bytes_accessed=(dp * b_pad + rows * width) * itemsize
        + hp * 3 * 4 + b_pad * 4,
    )

    out = pl.pallas_call(
        kernel,
        out_shape=jax.ShapeDtypeStruct((1, b_pad), jnp.float32),
        grid=(n_tiles,),
        in_specs=[
            # x stream: lane-dense (dp, TILE_B) blocks, auto double-buffered.
            pl.BlockSpec((dp, tile_b), lambda i: (0, i)),
            # packed weights: constant index_map -> fetched once, VMEM-resident.
            pl.BlockSpec((rows, width), lambda i: (0, 0)),
            # f32 biases (+ b3 scalar): tiny, VMEM-resident.
            pl.BlockSpec((hp, 3), lambda i: (0, 0)),
        ],
        out_specs=pl.BlockSpec((1, tile_b), lambda i: (0, i)),   # lane-dense values
        compiler_params=pltpu.CompilerParams(
            dimension_semantics=("parallel",),    # shard batch tiles on v7x cores
        ),
        cost_estimate=cost,
    )(xt, wbuf, bias)

    values = out.reshape(b_pad)[:b].reshape(b, 1)
    # Critic.forward: unflatten last dim only when output_shape has rank > 1.
    if len(output_shape) > 1:
        values = values.reshape(values.shape[:-1] + tuple(output_shape))
    return values


def reference_forward(x, params):
    w1, b1, w2, b2, w3, b3 = params
    h1 = jnp.maximum(x @ w1 + b1, 0.0)
    h2 = jnp.maximum(h1 @ w2 + b2, 0.0)
    return h2 @ w3 + b3


def init_params(key, d_in, hidden):
    ks = jax.random.split(key, 6)
    scale1 = 1.0 / jnp.sqrt(d_in)
    scale2 = 1.0 / jnp.sqrt(hidden)
    w1 = jax.random.normal(ks[0], (d_in, hidden), jnp.float32) * scale1
    b1 = jax.random.normal(ks[1], (1, hidden), jnp.float32) * 0.01
    w2 = jax.random.normal(ks[2], (hidden, hidden), jnp.float32) * scale2
    b2 = jax.random.normal(ks[3], (1, hidden), jnp.float32) * 0.01
    w3 = jax.random.normal(ks[4], (hidden, 1), jnp.float32) * scale2
    b3 = jax.random.normal(ks[5], (1, 1), jnp.float32) * 0.01
    return (w1, b1, w2, b2, w3, b3)


if __name__ == "__main__":
    key = jax.random.PRNGKey(0)
    k_x, k_p = jax.random.split(key)

    # Small but non-trivial: hidden < 128 (hidden-dim padding), B not a multiple
    # of every tile (batch padding + multi-step grid exercised below).
    B, D_IN, HIDDEN = 384, 32, 64
    x = jax.random.normal(k_x, (B, D_IN), jnp.float32)
    params = init_params(k_p, D_IN, HIDDEN)
    ref = reference_forward(x, params)

    # 1) Default config (f32, large tile -> single grid step, no batch padding).
    v0 = jax.block_until_ready(critic_forward(x, params))
    assert v0.shape == (B, 1), v0.shape
    assert jnp.allclose(v0, ref, atol=1e-4, rtol=1e-4), "f32 default mismatch"

    # 2) Multi-tile grid + batch padding path (f32, strict check).
    v1 = jax.block_until_ready(critic_forward(x, params, tile_b=256))
    assert v1.shape == (B, 1), v1.shape
    assert jnp.allclose(v1, ref, atol=1e-4, rtol=1e-4), "f32 tiled mismatch"

    # 3) bf16 compute (v6e/v7x guidance): f32 accumulation + f32 biases.
    v2 = jax.block_until_ready(
        critic_forward(x, params, tile_b=128, compute_dtype=jnp.bfloat16))
    assert v2.shape == (B, 1), v2.shape
    assert jnp.allclose(v2, ref, atol=5e-2, rtol=5e-2), "bf16 mismatch"

    print("KERNEL_OK")
</pallas_src>

<mosaic_0001>
module attributes {stable_mosaic.version = 11 : i64} {
  func.func @kernel(%arg0: i32, %arg1: memref<32x384xf32, #tpu.memory_space<vmem>>, %arg2: memref<264x128xf32, #tpu.memory_space<vmem>>, %arg3: memref<128x3xf32, #tpu.memory_space<vmem>>, %arg4: memref<1x384xf32, #tpu.memory_space<vmem>>) attributes {dimension_semantics = [#tpu.dimension_semantics<parallel>], iteration_bounds = array<i64: 1>, scalar_prefetch = 0 : i64, scratch_operands = 0 : i64, tpu.core_type = #tpu.core_type<tc>, window_params = [{transform_indices = @transform_0, window_bounds = array<i64: 32, 384>}, {pipeline_mode = #tpu.pipeline_mode<synchronous>, transform_indices = @transform_1, window_bounds = array<i64: 264, 128>}, {pipeline_mode = #tpu.pipeline_mode<synchronous>, transform_indices = @transform_2, window_bounds = array<i64: 128, 3>}, {transform_indices = @transform_3, window_bounds = array<i64: 1, 384>}]} {
    %c0 = arith.constant 0 : index
    %c0_0 = arith.constant 0 : index
    %0 = vector.load %arg1[%c0, %c0_0] : memref<32x384xf32, #tpu.memory_space<vmem>>, vector<32x384xf32>
    %c0_1 = arith.constant 0 : index
    %c0_2 = arith.constant 0 : index
    %1 = vector.load %arg2[%c0_1, %c0_2] : memref<264x128xf32, #tpu.memory_space<vmem>>, vector<128x32xf32>
    %c128 = arith.constant 128 : index
    %c0_3 = arith.constant 0 : index
    %2 = vector.load %arg2[%c128, %c0_3] : memref<264x128xf32, #tpu.memory_space<vmem>>, vector<128x128xf32>
    %c256 = arith.constant 256 : index
    %c0_4 = arith.constant 0 : index
    %3 = vector.load %arg2[%c256, %c0_4] : memref<264x128xf32, #tpu.memory_space<vmem>>, vector<1x128xf32>
    %c0_5 = arith.constant 0 : index
    %c0_6 = arith.constant 0 : index
    %4 = vector.load %arg3[%c0_5, %c0_6] : memref<128x3xf32, #tpu.memory_space<vmem>>, vector<128x1xf32>
    %c0_7 = arith.constant 0 : index
    %c1 = arith.constant 1 : index
    %5 = vector.load %arg3[%c0_7, %c1] : memref<128x3xf32, #tpu.memory_space<vmem>>, vector<128x1xf32>
    %c0_8 = arith.constant 0 : index
    %c2 = arith.constant 2 : index
    %6 = vector.load %arg3[%c0_8, %c2] : memref<128x3xf32, #tpu.memory_space<vmem>>, vector<1x1xf32>
    %cst = arith.constant dense<0.000000e+00> : vector<128x384xf32>
    %7 = tpu.matmul %1, %0, %cst {dimension_numbers = #tpu.dot_dimension_numbers<[1], [0], [0], [1], [0, 0, 1, 1], [], []>} : vector<128x32xf32>, vector<32x384xf32>, vector<128x384xf32> -> vector<128x384xf32>
    %8 = vector.broadcast %4 : vector<128x1xf32> to vector<128x384xf32>
    %9 = arith.addf %7, %8 : vector<128x384xf32>
    %cst_9 = arith.constant 0.000000e+00 : f32
    %10 = vector.broadcast %cst_9 : f32 to vector<128x384xf32>
    %11 = arith.maximumf %9, %10 : vector<128x384xf32>
    %cst_10 = arith.constant dense<0.000000e+00> : vector<128x384xf32>
    %12 = tpu.matmul %2, %11, %cst_10 {dimension_numbers = #tpu.dot_dimension_numbers<[1], [0], [0], [1], [0, 0, 1, 1], [], []>} : vector<128x128xf32>, vector<128x384xf32>, vector<128x384xf32> -> vector<128x384xf32>
    %13 = vector.broadcast %5 : vector<128x1xf32> to vector<128x384xf32>
    %14 = arith.addf %12, %13 : vector<128x384xf32>
    %cst_11 = arith.constant 0.000000e+00 : f32
    %15 = vector.broadcast %cst_11 : f32 to vector<128x384xf32>
    %16 = arith.maximumf %14, %15 : vector<128x384xf32>
    %cst_12 = arith.constant dense<0.000000e+00> : vector<1x384xf32>
    %17 = tpu.matmul %3, %16, %cst_12 {dimension_numbers = #tpu.dot_dimension_numbers<[1], [0], [0], [1], [0, 0, 1, 1], [], []>} : vector<1x128xf32>, vector<128x384xf32>, vector<1x384xf32> -> vector<1x384xf32>
    %18 = vector.broadcast %6 : vector<1x1xf32> to vector<1x384xf32>
    %19 = arith.addf %17, %18 : vector<1x384xf32>
    %c0_13 = arith.constant 0 : index
    %c0_14 = arith.constant 0 : index
    %20 = vector.load %arg4[%c0_13, %c0_14] : memref<1x384xf32, #tpu.memory_space<vmem>>, vector<1x384xf32>
    tpu.vector_store %arg4[%c0_13, %c0_14], %19 {strides = array<i32>} : memref<1x384xf32, #tpu.memory_space<vmem>>, vector<1x384xf32>,
    return
  }
  func.func @transform_0(%arg0: i32) -> (i32, i32) {
    %c0_i32 = arith.constant 0 : i32
    %c0_i32_0 = arith.constant 0 : i32
    return %c0_i32, %arg0 : i32, i32
  }
  func.func @transform_1(%arg0: i32) -> (i32, i32) {
    %c0_i32 = arith.constant 0 : i32
    %c0_i32_0 = arith.constant 0 : i32
    %c0_i32_1 = arith.constant 0 : i32
    return %c0_i32, %c0_i32_0 : i32, i32
  }
  func.func @transform_2(%arg0: i32) -> (i32, i32) {
    %c0_i32 = arith.constant 0 : i32
    %c0_i32_0 = arith.constant 0 : i32
    %c0_i32_1 = arith.constant 0 : i32
    return %c0_i32, %c0_i32_0 : i32, i32
  }
  func.func @transform_3(%arg0: i32) -> (i32, i32) {
    %c0_i32 = arith.constant 0 : i32
    %c0_i32_0 = arith.constant 0 : i32
    return %c0_i32, %arg0 : i32, i32
  }
}

</mosaic_0001>

<bundles_post_ra>
// kernel: tpu_custom_call.1
= control target key start
LH: loop header
LB: loop body
LE: loop exit
PB: predicated region body
PF: predicated region fallthrough
CT: control target
= control target key end

     0   :  { %8 = vsyncpa [#allocation3], 0  ;;  %s2110_s0 = inlined_call_operand.vmem [shape: f32[32,384], index: 0, kind: input, shape index: {}]   ;;  %s2111_s1 = inlined_call_operand.hbm [shape: f32[264,128], index: 1, kind: input, shape index: {}]   ;;  %s2112_s2 = inlined_call_operand.vmem [shape: f32[128,3], index: 2, kind: input, shape index: {}]   ;;  %s2113_s3 = inlined_call_operand.hbm [shape: f32[1,384], index: 3, kind: output, shape index: {}]  }
   0x1   :  { %9 = vsyncpa [#allocation4], 0  ;;  %s1469_s12 = smov [#allocation2]  }
   0x2   :  { %s17_s13 = sshll.u32 %s1469_s12, 4  ;;  %s18_s13 = int_to_ptr.vmem [resolvable:$true] %s17_s13 }
   0x3   :  { %s1433_s14 = scalar_lea.vmem %s18_s13, 4224  ;;  %p1438_p1 = scmp.lt.s32.totalorder %s18_s13, %s18_s13 }
   0x4   :  { %p1434_p0 = scmp.ne.s32.totalorder %s18_s13, %s1433_s14  ;;  %p1439_p2 = scmp.lt.s32.totalorder %s1433_s14, %s1433_s14 }
   0x6   :  { %p1440_p3 = por %p1439_p2, %p1438_p1 }
   0x8   :  { %p1441_p4 = pnand %p1440_p3, %p1434_p0 }
   0xa   :  { %1444 = shalt.err (!%p1441_p4)
}
   0xb   :  { %s1470_s15 = smov 128   ;;  %s1471_s16 = smov 8  }
   0xc   :  { %23 = dma.hbm_to_vmem [thread:$0]  %s2111_s1, 4224, %s18_s13, [#allocation3], %s1470_s15, %s1470_s15, %s1471_s16  }
   0xd   :  { %1465 = dma.done.wait [#allocation3], 4224  }
   0xe   :  { %1466 = vsyncadd [#allocation3], 4294963072  ;;  %v1472_v0 = vmov 0.0   ;;  %v1473_v1 = vmov 0   ;;  %v39_v2 = vld [vmem:[%s2110_s0 + $0x50] sm:$0xff]  ;;  %v40_v3 = vld [vmem:[%s2110_s0 + $0x58] sm:$0xff] }
   0xf   :  { %284 = vmatprep.mubr.f32.mxu0 %v1472_v0  ;;  %1420 = vset.pattern.permute.xlu1 %v1473_v1  ;;  %v38_v4 = vld [vmem:[%s2110_s0 + $0x48] sm:$0xff]  ;;  %v36_v5 = vld [vmem:[%s2110_s0 + $0x38] sm:$0xff]  ;;  %v37_v6 = vld [vmem:[%s2110_s0 + $0x40] sm:$0xff]  ;;  %vm171_vm0 = vcmask 261120   ;;  %v1474_v57 = vmov 1   ;;  %vm1475_vm1 = vmmov 0  }
  0x10   :  { %1419 = vset.pattern.permute.xlu0 %v1473_v1  ;;  %244 = vmatprep.subr.mxu0 %v39_v2  ;;  %v35_v7 = vld [vmem:[%s2110_s0 + $0x30] sm:$0xff]  ;;  %v33_v8 = vld [vmem:[%s2110_s0 + $0x20] sm:$0xff]  ;;  %v34_v9 = vld [vmem:[%s2110_s0 + $0x28] sm:$0xff] }
  0x11   :  { %1286 = vmatprep.subr.mxu1 %v40_v3  ;;  %245 = vmatpush1.msra.mxu0 %v38_v4  ;;  %v32_v10 = vld [vmem:[%s2110_s0 + $0x18] sm:$0xff]  ;;  %v30_v11 = vld [vmem:[%s2110_s0 + $0x8] sm:$0xff]  ;;  %v31_v12 = vld [vmem:[%s2110_s0 + $0x10] sm:$0xff] }
  0x12   :  { %1287 = vmatpush3.msra.mxu1 %v40_v3  ;;  %246 = vmatprep.subr.mxu0 %v36_v5  ;;  %v29_v13 = vld [vmem:[%s2110_s0] sm:$0xff]  ;;  %v42_v15 = vld [vmem:[#allocation2 + $0x8] sm:$0xff]  ;;  %v43_v16 = vld [vmem:[#allocation2 + $0x10] sm:$0xff] }
  0x13   :  { %1288 = vmatprep.subr.mxu1 %v37_v6  ;;  %247 = vmatpush1.msra.mxu0 %v35_v7  ;;  %v41_v14 = vld [vmem:[#allocation2] sm:$0xff]  ;;  %v1544_v17 = vld [vmem:[%s2112_s2 + $0x68] sm:$0xff]  ;;  %v1549_v18 = vld [vmem:[%s2112_s2 + $0x78] sm:$0xff] }
  0x14   :  { %1289 = vmatpush3.msra.mxu1 %v37_v6  ;;  %248 = vmatprep.subr.mxu0 %v33_v8  ;;  %v44_v19 = vld [vmem:[#allocation2 + $0x18] sm:$0xff]  ;;  %v45_v20 = vld [vmem:[#allocation2 + $0x20] sm:$0xff]  ;;  %v1565_v22 = vld [vmem:[%s2112_s2 + $0x70] sm:$0xff] }
  0x15   :  { %1290 = vmatprep.subr.mxu1 %v34_v9  ;;  %249 = vmatpush1.msra.mxu0 %v32_v10  ;;  %v1559_v21 = vld [vmem:[%s2112_s2 + $0x60] sm:$0xff]  ;;  %v46_v23 = vld [vmem:[#allocation2 + $0x28] sm:$0xff]  ;;  %v47_v24 = vld [vmem:[#allocation2 + $0x30] sm:$0xff] }
  0x16   :  { %1291 = vmatpush3.msra.mxu1 %v34_v9  ;;  %250 = vmatprep.subr.mxu0 %v30_v11  ;;  %v1575_v25 = vld [vmem:[%s2112_s2 + $0x50] sm:$0xff]  ;;  %v1581_v26 = vld [vmem:[%s2112_s2 + $0x58] sm:$0xff]  ;;  %v49_v28 = vld [vmem:[#allocation2 + $0x40] sm:$0xff] }
  0x17   :  { %1292 = vmatprep.subr.mxu1 %v31_v12  ;;  %251 = vmatpush1.msra.mxu0 %v29_v13  ;;  %v48_v27 = vld [vmem:[#allocation2 + $0x38] sm:$0xff]  ;;  %v1591_v29 = vld [vmem:[%s2112_s2 + $0x40] sm:$0xff]  ;;  %v1597_v30 = vld [vmem:[%s2112_s2 + $0x48] sm:$0xff] }
  0x18   :  { %1293 = vmatpush3.msra.mxu1 %v31_v12  ;;  %1294 = vmatprep.mubr.msk.f32.mxu1 %vm171_vm0, %v41_v14  ;;  %v50_v31 = vld [vmem:[#allocation2 + $0x48] sm:$0xff]  ;;  %v51_v32 = vld [vmem:[#allocation2 + $0x50] sm:$0xff]  ;;  %v1613_v34 = vld [vmem:[%s2112_s2 + $0x38] sm:$0xff] }
  0x19   :  { %1185 = vmatmul.mubr.msk.f32.vlgmr.msra.gmra.mxu0 %vm171_vm0, %v41_v14  ;;  %1295 = vmatmul.mubr.msk.f32.vlgmr.msra.gmra.mxu1 %vm171_vm0, %v42_v15  ;;  %v1607_v33 = vld [vmem:[%s2112_s2 + $0x30] sm:$0xff]  ;;  %v52_v35 = vld [vmem:[#allocation2 + $0x58] sm:$0xff]  ;;  %v53_v36 = vld [vmem:[#allocation2 + $0x60] sm:$0xff] }
  0x1a   :  { %290 = vmatprep.mubr.f32.mxu0 %v1472_v0  ;;  %1297 = vmatprep.mubr.msk.f32.mxu1 %vm171_vm0, %v43_v16  ;;  %v1623_v37 = vld [vmem:[%s2112_s2 + $0x20] sm:$0xff]  ;;  %v1629_v38 = vld [vmem:[%s2112_s2 + $0x28] sm:$0xff]  ;;  %v55_v40 = vld [vmem:[#allocation2 + $0x70] sm:$0xff] }
  0x1b   :  { %158 = vperm.xlu1 %1420, %v1544_v17   ;;  %168 = vperm.xlu0 %1419, %v1549_v18   ;;  %v54_v39 = vld [vmem:[#allocation2 + $0x68] sm:$0xff]  ;;  %v1639_v41 = vld [vmem:[%s2112_s2 + $0x10] sm:$0xff]  ;;  %v1645_v42 = vld [vmem:[%s2112_s2 + $0x18] sm:$0xff] }
  0x1c   :  { %v56_v43 = vld [vmem:[#allocation2 + $0x78] sm:$0xff]  ;;  %v1655_v44 = vld [vmem:[%s2112_s2] sm:$0xff]  ;;  %v1661_v45 = vld [vmem:[%s2112_s2 + $0x8] sm:$0xff] }
  0x1d   :  { %1186 = vmatmul.mubr.msk.f32.gmra.mxu0 %vm171_vm0, %v42_v15  ;;  %1298 = vmatmul.mubr.msk.f32.gmra.mxu1 %vm171_vm0, %v44_v19  ;;  %v1683_v46 = vld [vmem:[#allocation2 + $0x80] sm:$0xff] }
  0x1e   :  { %296 = vmatprep.mubr.f32.mxu0 %v1472_v0  ;;  %1300 = vmatprep.mubr.msk.f32.mxu1 %vm171_vm0, %v45_v20 }
  0x1f   :  { %153 = vperm.xlu1 %1420, %v1559_v21   ;;  %163 = vperm.xlu0 %1419, %v1565_v22  }
  0x21   :  { %1187 = vmatmul.mubr.msk.f32.gmra.mxu0 %vm171_vm0, %v43_v16  ;;  %1301 = vmatmul.mubr.msk.f32.gmra.mxu1 %vm171_vm0, %v46_v23 }
  0x22   :  { %302 = vmatprep.mubr.f32.mxu0 %v1472_v0  ;;  %1303 = vmatprep.mubr.msk.f32.mxu1 %vm171_vm0, %v47_v24 }
  0x23   :  { %143 = vperm.xlu1 %1420, %v1575_v25   ;;  %148 = vperm.xlu0 %1419, %v1581_v26  }
  0x25   :  { %1188 = vmatmul.mubr.msk.f32.gmra.mxu0 %vm171_vm0, %v44_v19  ;;  %1304 = vmatmul.mubr.msk.f32.gmra.mxu1 %vm171_vm0, %v48_v27 }
  0x26   :  { %308 = vmatprep.mubr.f32.mxu0 %v1472_v0  ;;  %1306 = vmatprep.mubr.msk.f32.mxu1 %vm171_vm0, %v49_v28 }
  0x27   :  { %133 = vperm.xlu1 %1420, %v1591_v29   ;;  %138 = vperm.xlu0 %1419, %v1597_v30  }
  0x29   :  { %1189 = vmatmul.mubr.msk.f32.gmra.mxu0 %vm171_vm0, %v45_v20  ;;  %1307 = vmatmul.mubr.msk.f32.gmra.mxu1 %vm171_vm0, %v50_v31 }
  0x2a   :  { %314 = vmatprep.mubr.f32.mxu0 %v1472_v0  ;;  %1309 = vmatprep.mubr.msk.f32.mxu1 %vm171_vm0, %v51_v32 }
  0x2b   :  { %123 = vperm.xlu1 %1420, %v1607_v33   ;;  %128 = vperm.xlu0 %1419, %v1613_v34  }
  0x2d   :  { %1190 = vmatmul.mubr.msk.f32.gmra.mxu0 %vm171_vm0, %v46_v23  ;;  %1310 = vmatmul.mubr.msk.f32.gmra.mxu1 %vm171_vm0, %v52_v35 }
  0x2e   :  { %320 = vmatprep.mubr.f32.mxu0 %v1472_v0  ;;  %1312 = vmatprep.mubr.msk.f32.mxu1 %vm171_vm0, %v53_v36 }
  0x2f   :  { %113 = vperm.xlu1 %1420, %v1623_v37   ;;  %118 = vperm.xlu0 %1419, %v1629_v38  }
  0x31   :  { %1191 = vmatmul.mubr.msk.f32.gmra.mxu0 %vm171_vm0, %v47_v24  ;;  %1313 = vmatmul.mubr.msk.f32.gmra.mxu1 %vm171_vm0, %v54_v39 }
  0x32   :  { %326 = vmatprep.mubr.f32.mxu0 %v1472_v0  ;;  %1315 = vmatprep.mubr.msk.f32.mxu1 %vm171_vm0, %v55_v40 }
  0x33   :  { %103 = vperm.xlu1 %1420, %v1639_v41   ;;  %108 = vperm.xlu0 %1419, %v1645_v42  }
  0x35   :  { %1192 = vmatmul.mubr.msk.f32.gmra.mxu0 %vm171_vm0, %v48_v27  ;;  %1316 = vmatmul.mubr.msk.f32.gmra.mxu1 %vm171_vm0, %v56_v43 }
  0x36   :  { %332 = vmatprep.mubr.f32.mxu0 %v1472_v0  ;;  %702 = vmatprep.mubr.f32.mxu1 %v1472_v0 }
  0x37   :  { %93 = vperm.xlu1 %1420, %v1655_v44   ;;  %98 = vperm.xlu0 %1419, %v1661_v45  }
  0x39   :  { %1193 = vmatmul.mubr.msk.f32.gmra.mxu0 %vm171_vm0, %v49_v28 }
  0x3a   :  { %338 = vmatprep.mubr.f32.mxu0 %v1472_v0 }
  0x3b   :  { %1421 = vset.pattern.permute.xlu0 %v1474_v57  ;;  %1422 = vset.pattern.permute.xlu1 %v1474_v57 }
  0x3c   :  { %635 = vperm.xlu0 %1421, %v1549_v18   ;;  %631 = vperm.xlu1 %1422, %v1565_v22  }
  0x3d   :  { %1194 = vmatmul.mubr.msk.f32.gmra.mxu0 %vm171_vm0, %v50_v31 }
  0x3e   :  { %344 = vmatprep.mubr.f32.mxu0 %v1472_v0 }
  0x40   :  { %623 = vperm.xlu0 %1421, %v1559_v21   ;;  %627 = vperm.xlu1 %1422, %v1544_v17  }
  0x41   :  { %1195 = vmatmul.mubr.msk.f32.gmra.mxu0 %vm171_vm0, %v51_v32 }
  0x42   :  { %350 = vmatprep.mubr.f32.mxu0 %v1472_v0 }
  0x44   :  { %615 = vperm.xlu0 %1421, %v1575_v25   ;;  %619 = vperm.xlu1 %1422, %v1581_v26  }
  0x45   :  { %1196 = vmatmul.mubr.msk.f32.gmra.mxu0 %vm171_vm0, %v52_v35 }
  0x46   :  { %356 = vmatprep.mubr.f32.mxu0 %v1472_v0 }
  0x48   :  { %607 = vperm.xlu0 %1421, %v1591_v29   ;;  %611 = vperm.xlu1 %1422, %v1597_v30  }
  0x49   :  { %1197 = vmatmul.mubr.msk.f32.gmra.mxu0 %vm171_vm0, %v53_v36 }
  0x4a   :  { %362 = vmatprep.mubr.f32.mxu0 %v1472_v0 }
  0x4c   :  { %599 = vperm.xlu0 %1421, %v1607_v33   ;;  %603 = vperm.xlu1 %1422, %v1613_v34  }
  0x4d   :  { %1198 = vmatmul.mubr.msk.f32.gmra.mxu0 %vm171_vm0, %v54_v39 }
  0x4e   :  { %368 = vmatprep.mubr.f32.mxu0 %v1472_v0 }
  0x50   :  { %591 = vperm.xlu0 %1421, %v1623_v37   ;;  %595 = vperm.xlu1 %1422, %v1629_v38  }
  0x51   :  { %1199 = vmatmul.mubr.msk.f32.gmra.mxu0 %vm171_vm0, %v55_v40 }
  0x52   :  { %374 = vmatprep.mubr.f32.mxu0 %v1472_v0 }
  0x54   :  { %583 = vperm.xlu0 %1421, %v1639_v41   ;;  %587 = vperm.xlu1 %1422, %v1645_v42  }
  0x55   :  { %1200 = vmatmul.mubr.msk.f32.gmra.mxu0 %vm171_vm0, %v56_v43 }
  0x56   :  { %1350 = vmatprep.mubr.f32.mxu0 %v1683_v46 }
  0x58   :  { %575 = vperm.xlu0 %1421, %v1655_v44   ;;  %579 = vperm.xlu1 %1422, %v1661_v45  }
  0x96   :  { %v1710_v59 = vpop.permute.xlu0 %168  ;;  %v1716_v62 = vpop.permute.xlu1 %158 }
  0x9a   :  { %v1728_v4 = vpop.permute.xlu0 %163  ;;  %v1734_v7 = vpop.permute.xlu1 %153 }
  0x9e   :  { %v1742_v12 = vpop.permute.xlu0 %148  ;;  %v1746_v15 = vpop.permute.xlu1 %143 }
  0xa2   :  { %v1754_v20 = vpop.permute.xlu0 %138  ;;  %v1762_v25 = vpop.permute.xlu1 %133 }
  0xa6   :  { %v1772_v35 = vpop.permute.xlu0 %128  ;;  %v1778_v39 = vpop.permute.xlu1 %123 }
  0xaa   :  { %v1794_v44 = vpop.permute.xlu1 %113 }
  0xd9   :  { %v1686_v47 = vpop.f32.mrf.mxu0  ;;  %v1688_v48 = vpop.f32.mrf.mxu1 }
  0xdb   :  { %v1690_v49 = vpop.f32.mrf.mxu0  ;;  %v1692_v50 = vpop.f32.mrf.mxu1 }
  0xdd   :  { %v1694_v51 = vpop.f32.mrf.mxu0  ;;  %v1696_v52 = vpop.f32.mrf.mxu1 }
  0xdf   :  { %v1698_v53 = vpop.f32.mrf.mxu0  ;;  %v1700_v54 = vpop.f32.mrf.mxu1 }
  0xe1   :  { %v1702_v55 = vpop.f32.mrf.mxu0  ;;  %v1704_v56 = vpop.f32.mrf.mxu1 }
  0xe3   :  { %v1706_v58 = vpop.f32.mrf.mxu0  ;;  %v1712_v60 = vpop.f32.mrf.mxu1 }
  0xe5   :  { %v1714_v61 = vpop.f32.mrf.mxu0  ;;  %v1718_v63 = vpop.f32.mrf.mxu1 }
  0xe7   :  { %v1720_v1 = vpop.f32.mrf.mxu0  ;;  %v1724_v2 = vpop.f32.mrf.mxu1 }
  0xe8   :  { %v478_v45 = vadd.f32 %v1724_v2, %v1778_v39 }
  0xe9   :  { %v1726_v3 = vpop.f32.mrf.mxu0  ;;  %v1308_v5 = vpop.f32.mrf.mxu1 }
  0xea   :  { %v493_v40 = vadd.f32 %v1308_v5, %v1754_v20  ;;  %v483_v5 = vadd.f32 %v1718_v63, %v1772_v35 }
  0xeb   :  { %v1730_v6 = vpop.f32.mrf.mxu0  ;;  %v487_v8 = vpop.f32.mrf.mxu1 }
  0xec   :  { %v488_v41 = vadd.f32 %v487_v8, %v1762_v25 }
  0xed   :  { %v1736_v9 = vpop.f32.mrf.mxu0  ;;  %v1311_v10 = vpop.f32.mrf.mxu1 }
  0xee   :  { %v503_v31 = vadd.f32 %v1311_v10, %v1742_v12  ;;  %v552_v8 = vmax.f32 %v488_v41, 0.0 }
  0xef   :  { %v1738_v11 = vpop.f32.mrf.mxu0  ;;  %v497_v13 = vpop.f32.mrf.mxu1 }
  0xf0   :  { %v498_v36 = vadd.f32 %v497_v13, %v1746_v15  ;;  %v561_v43 = vmax.f32 %v503_v31, 0.0  ;;  %v1788_v13 = vpop.permute.xlu0 %118 }
  0xf1   :  { %v1744_v14 = vpop.f32.mrf.mxu0  ;;  %v1314_v16 = vpop.f32.mrf.mxu1 }
  0xf2   :  { %v513_v22 = vadd.f32 %v1314_v16, %v1716_v62  ;;  %v558_v42 = vmax.f32 %v498_v36, 0.0  ;;  %v555_v16 = vmax.f32 %v493_v40, 0.0 }
  0xf3   :  { %v1748_v17 = vpop.f32.mrf.mxu0  ;;  %v507_v18 = vpop.f32.mrf.mxu1 }
  0xf4   :  { %v508_v27 = vadd.f32 %v507_v18, %v1734_v7  ;;  %v567_v32 = vmax.f32 %v513_v22, 0.0  ;;  %v473_v22 = vadd.f32 %v1704_v56, %v1788_v13 }
  0xf5   :  { %v1752_v19 = vpop.f32.mrf.mxu0  ;;  %v1317_v21 = vpop.f32.mrf.mxu1 }
  0xf6   :  { %v523_v23 = vadd.f32 %v1317_v21, %v1710_v59  ;;  %v564_v37 = vmax.f32 %v508_v27, 0.0  ;;  %v468_v27 = vadd.f32 %v1712_v60, %v1794_v44  ;;  %v543_v56 = vmax.f32 %v473_v22, 0.0 }
  0xf7   :  { %v1758_v24 = vpop.f32.mrf.mxu0  ;;  %v517_v26 = vpop.f32.mrf.mxu1 }
  0xf8   :  { %v573_v28 = vmax.f32 %v523_v23, 0.0  ;;  %v518_v29 = vadd.f32 %v517_v26, %v1728_v4  ;;  %v549_v23 = vmax.f32 %v483_v5, 0.0  ;;  %v1804_v26 = vpop.permute.xlu0 %108  ;;  %v540_v36 = vmax.f32 %v468_v27, 0.0 }
  0xf9   :  { %v1766_v30 = vpop.f32.mrf.mxu0  ;;  %v463_v31 = vadd.f32 %v1696_v52, %v1804_v26 }
  0xfa   :  { %v570_v33 = vmax.f32 %v518_v29, 0.0  ;;  %1318 = vmatprep.subr.mxu0 %v573_v28  ;;  %v1808_v29 = vpop.permute.xlu1 %103 }
  0xfb   :  { %v1769_v34 = vpop.f32.mrf.mxu0  ;;  %1319 = vmatpush3.msra.mxu0 %v573_v28  ;;  %v546_v28 = vmax.f32 %v478_v45, 0.0 }
  0xfc   :  { %1320 = vmatprep.subr.mxu0 %v570_v33  ;;  %v1814_v60 = vpop.permute.xlu0 %98 }
  0xfd   :  { %v1776_v38 = vpop.f32.mrf.mxu0  ;;  %1321 = vmatpush3.msra.mxu0 %v570_v33  ;;  %v458_v33 = vadd.f32 %v1700_v54, %v1808_v29  ;;  %v453_v40 = vadd.f32 %v1688_v48, %v1814_v60 }
  0xfe   :  { %1322 = vmatprep.subr.mxu0 %v567_v32  ;;  %v1818_v52 = vpop.permute.xlu1 %93 }
  0xff   :  { %v1781_v57 = vpop.f32.mrf.mxu0  ;;  %1323 = vmatpush3.msra.mxu0 %v567_v32  ;;  %v534_v5 = vmax.f32 %v458_v33, 0.0  ;;  %v531_v45 = vmax.f32 %v453_v40, 0.0 }
 0x100   :  { %1324 = vmatprep.subr.mxu0 %v564_v37 }
 0x101   :  { %v1786_v10 = vpop.f32.mrf.mxu0  ;;  %1325 = vmatpush3.msra.mxu0 %v564_v37 }
 0x102   :  { %1326 = vmatprep.subr.mxu0 %v561_v43 }
 0x103   :  { %v1792_v18 = vpop.f32.mrf.mxu0  ;;  %1327 = vmatpush3.msra.mxu0 %v561_v43  ;;  %v537_v43 = vmax.f32 %v463_v31, 0.0 }
 0x104   :  { %1328 = vmatprep.subr.mxu0 %v558_v42 }
 0x105   :  { %v1798_v21 = vpop.f32.mrf.mxu0  ;;  %1329 = vmatpush3.msra.mxu0 %v558_v42  ;;  %v448_v42 = vadd.f32 %v1692_v50, %v1818_v52 }
 0x106   :  { %1330 = vmatprep.subr.mxu0 %v555_v16 }
 0x107   :  { %v1802_v63 = vpop.f32.mrf.mxu0  ;;  %1331 = vmatpush3.msra.mxu0 %v555_v16 }
 0x108   :  { %1332 = vmatprep.subr.mxu0 %v552_v8 }
 0x109   :  { %v358_v2 = vpop.f32.mrf.mxu0  ;;  %1333 = vmatpush3.msra.mxu0 %v552_v8  ;;  %v528_v8 = vmax.f32 %v448_v42, 0.0 }
 0x10a   :  { %1334 = vmatprep.subr.mxu0 %v549_v23 }
 0x10b   :  { %v360_v32 = vpop.f32.mrf.mxu0  ;;  %1335 = vmatpush3.msra.mxu0 %v549_v23 }
 0x10c   :  { %1336 = vmatprep.subr.mxu0 %v546_v28  ;;  %v361_v42 = vadd.f32 %v360_v32, %v1734_v7  ;;  %v353_v32 = vadd.f32 %v1798_v21, %v1742_v12 }
 0x10d   :  { %v364_v37 = vpop.f32.mrf.mxu0  ;;  %1337 = vmatpush3.msra.mxu0 %v546_v28  ;;  %v1825_v28 = vld [vmem:[#allocation2 + $0x88] sm:$0xff] }
 0x10e   :  { %1338 = vmatprep.subr.mxu0 %v543_v56  ;;  %v365_v40 = vadd.f32 %v364_v37, %v1716_v62 }
 0x10f   :  { %v366_v41 = vpop.f32.mrf.mxu0  ;;  %1339 = vmatpush3.msra.mxu0 %v543_v56  ;;  %v1828_v56 = vld [vmem:[#allocation2 + $0x90] sm:$0xff] }
 0x110   :  { %1340 = vmatprep.subr.mxu0 %v540_v36  ;;  %v367_v33 = vadd.f32 %v366_v41, %v1716_v62  ;;  %v1838_v41 = vld [vmem:[#allocation2 + $0xa0] sm:$0xff]  ;;  %v355_v62 = vadd.f32 %v1802_v63, %v1742_v12  ;;  %v347_v63 = vadd.f32 %v1786_v10, %v1746_v15  ;;  %v343_v12 = vadd.f32 %v1781_v57, %v1754_v20  ;;  %v1862_v10 = vld [vmem:[#allocation2 + $0xb8] sm:$0xff] }
 0x111   :  { %v370_v54 = vpop.f32.mrf.mxu0  ;;  %1341 = vmatpush3.msra.mxu0 %v540_v36  ;;  %v335_v57 = vadd.f32 %v1766_v30, %v1762_v25  ;;  %v1876_v30 = vld [vmem:[#allocation2 + $0xc8] sm:$0xff] }
 0x112   :  { %1342 = vmatprep.subr.mxu0 %v537_v43  ;;  %v371_v31 = vadd.f32 %v370_v54, %v1728_v4  ;;  %v566_v37 = vmax.f32 %v367_v33, 0.0  ;;  %v560_v21 = vmax.f32 %v355_v62, 0.0  ;;  %v325_v33 = vadd.f32 %v1748_v17, %v1778_v39 }
 0x113   :  { %v372_v16 = vpop.f32.mrf.mxu0  ;;  %1343 = vmatpush3.msra.mxu0 %v537_v43  ;;  %v317_v17 = vadd.f32 %v1736_v9, %v1788_v13  ;;  %v307_v9 = vadd.f32 %v1720_v1, %v1804_v26  ;;  %v301_v62 = vadd.f32 %v1706_v58, %v1808_v29  ;;  %v299_v1 = vadd.f32 %v1702_v55, %v1808_v29  ;;  %v72_v55 = vld [vmem:[#allocation2 + $0xf8] sm:$0xff] }
 0x114   :  { %1344 = vmatprep.subr.mxu0 %v534_v5  ;;  %v373_v27 = vadd.f32 %v372_v16, %v1728_v4  ;;  %v359_v4 = vadd.f32 %v358_v2, %v1734_v7  ;;  %v568_v54 = vmax.f32 %v371_v31, 0.0  ;;  %v565_v16 = vmax.f32 %v365_v40, 0.0  ;;  %v1848_v2 = vld [vmem:[#allocation2 + $0xa8] sm:$0xff]  ;;  %v1880_v40 = vld [vmem:[#allocation2 + $0xd0] sm:$0xff] }
 0x115   :  { %v376_v48 = vpop.f32.mrf.mxu0  ;;  %1345 = vmatpush3.msra.mxu0 %v534_v5  ;;  %v1835_v5 = vld [vmem:[#allocation2 + $0x98] sm:$0xff]  ;;  %v563_v7 = vmax.f32 %v361_v42, 0.0  ;;  %v313_v42 = vadd.f32 %v1730_v6, %v1794_v44  ;;  %v305_v6 = vadd.f32 %v1714_v61, %v1804_v26  ;;  %v295_v61 = vadd.f32 %v1698_v53, %v1814_v60 }
 0x116   :  { %v377_v22 = vadd.f32 %v376_v48, %v1710_v59  ;;  %1346 = vmatprep.subr.mxu0 %v531_v45  ;;  %v1852_v48 = vld [vmem:[#allocation2 + $0xb0] sm:$0xff]  ;;  %v536_v26 = vmax.f32 %v307_v9, 0.0  ;;  %v287_v29 = vadd.f32 %v1686_v47, %v1818_v52 }
 0x117   :  { %v378_v23 = vpop.f32.mrf.mxu0  ;;  %1347 = vmatpush3.msra.mxu0 %v531_v45  ;;  %v349_v45 = vadd.f32 %v1792_v18, %v1746_v15  ;;  %v341_v18 = vadd.f32 %v1776_v38, %v1754_v20  ;;  %v331_v20 = vadd.f32 %v1758_v24, %v1772_v35  ;;  %v554_v38 = vmax.f32 %v343_v12, 0.0 }
 0x118   :  { %v379_v50 = vadd.f32 %v378_v23, %v1710_v59  ;;  %1348 = vmatprep.subr.mxu0 %v528_v8  ;;  %v571_v43 = vmax.f32 %v377_v22, 0.0  ;;  %v569_v59 = vmax.f32 %v373_v27, 0.0  ;;  %v559_v22 = vmax.f32 %v353_v32, 0.0  ;;  %v71_v32 = vld [vmem:[#allocation2 + $0xf0] sm:$0xff] }
 0x119   :  { %1349 = vmatpush3.msra.mxu0 %v528_v8  ;;  %v562_v8 = vmax.f32 %v359_v4, 0.0  ;;  %v337_v23 = vadd.f32 %v1769_v34, %v1762_v25  ;;  %v557_v15 = vmax.f32 %v349_v45, 0.0  ;;  %v556_v27 = vmax.f32 %v347_v63, 0.0  ;;  %v1894_v4 = vld [vmem:[#allocation2 + $0xe0] sm:$0xff] }
 0x11a   :  { %v572_v36 = vmax.f32 %v379_v50, 0.0  ;;  %1351 = vmatmul.mubr.f32.vlgmr.msra.gmra.mxu0 %v1825_v28  ;;  %v1866_v50 = vld [vmem:[#allocation2 + $0xc0] sm:$0xff]  ;;  %v329_v34 = vadd.f32 %v1752_v19, %v1772_v35  ;;  %v553_v31 = vmax.f32 %v341_v18, 0.0  ;;  %v323_v24 = vadd.f32 %v1744_v14, %v1778_v39  ;;  %v1890_v39 = vld [vmem:[#allocation2 + $0xd8] sm:$0xff] }
 0x11b   :  { %1353 = vmatprep.mubr.f32.mxu0 %v1828_v56  ;;  %v551_v25 = vmax.f32 %v337_v23, 0.0  ;;  %v319_v19 = vadd.f32 %v1738_v11, %v1788_v13  ;;  %v548_v35 = vmax.f32 %v331_v20, 0.0  ;;  %v545_v14 = vmax.f32 %v325_v33, 0.0 }
 0x11c   :  { %638 = vmatprep.subr.mxu1 %v572_v36  ;;  %v550_v36 = vmax.f32 %v335_v57, 0.0  ;;  %v311_v11 = vadd.f32 %v1726_v3, %v1794_v44  ;;  %v539_v3 = vmax.f32 %v313_v42, 0.0  ;;  %v70_v44 = vld [vmem:[#allocation2 + $0xe8] sm:$0xff]  ;;  %v535_v58 = vmax.f32 %v305_v6, 0.0 }
 0x11d   :  { %639 = vmatpush1.msra.mxu1 %v571_v43  ;;  %v547_v43 = vmax.f32 %v329_v34, 0.0  ;;  %v542_v13 = vmax.f32 %v319_v19, 0.0  ;;  %v289_v45 = vadd.f32 %v1690_v49, %v1818_v52  ;;  %v532_v63 = vmax.f32 %v299_v1, 0.0 }
 0x11e   :  { %640 = vmatprep.subr.mxu1 %v569_v59  ;;  %1354 = vmatmul.mubr.f32.gmra.mxu0 %v1835_v5  ;;  %v544_v59 = vmax.f32 %v323_v24, 0.0  ;;  %v530_v53 = vmax.f32 %v295_v61, 0.0 }
 0x11f   :  { %641 = vmatpush1.msra.mxu1 %v568_v54  ;;  %1356 = vmatprep.mubr.f32.mxu0 %v1838_v41  ;;  %v541_v54 = vmax.f32 %v317_v17, 0.0 }
 0x120   :  { %642 = vmatprep.subr.mxu1 %v566_v37  ;;  %v538_v37 = vmax.f32 %v311_v11, 0.0 }
 0x121   :  { %643 = vmatpush1.msra.mxu1 %v565_v16  ;;  %v293_v16 = vadd.f32 %v1694_v51, %v1814_v60  ;;  %v527_v51 = vmax.f32 %v289_v45, 0.0  ;;  %v526_v60 = vmax.f32 %v287_v29, 0.0 }
 0x122   :  { %644 = vmatprep.subr.mxu1 %v563_v7  ;;  %1357 = vmatmul.mubr.f32.gmra.mxu0 %v1848_v2  ;;  %v533_v7 = vmax.f32 %v301_v62, 0.0 }
 0x123   :  { %645 = vmatpush1.msra.mxu1 %v562_v8  ;;  %1359 = vmatprep.mubr.f32.mxu0 %v1852_v48  ;;  %v529_v8 = vmax.f32 %v293_v16, 0.0 }
 0x124   :  { %646 = vmatprep.subr.mxu1 %v560_v21  ;;  %v1964_v21 = vpop.permute.xlu1 %631 }
 0x125   :  { %647 = vmatpush1.msra.mxu1 %v559_v22 }
 0x126   :  { %648 = vmatprep.subr.mxu1 %v557_v15  ;;  %1360 = vmatmul.mubr.f32.gmra.mxu0 %v1862_v10 }
 0x127   :  { %649 = vmatpush1.msra.mxu1 %v556_v27  ;;  %1362 = vmatprep.mubr.f32.mxu0 %v1866_v50 }
 0x128   :  { %650 = vmatprep.subr.mxu1 %v554_v38 }
 0x129   :  { %651 = vmatpush1.msra.mxu1 %v553_v31 }
 0x12a   :  { %652 = vmatprep.subr.mxu1 %v551_v25  ;;  %1363 = vmatmul.mubr.f32.gmra.mxu0 %v1876_v30 }
 0x12b   :  { %653 = vmatpush1.msra.mxu1 %v550_v36  ;;  %1365 = vmatprep.mubr.f32.mxu0 %v1880_v40 }
 0x12c   :  { %654 = vmatprep.subr.mxu1 %v548_v35 }
 0x12d   :  { %655 = vmatpush1.msra.mxu1 %v547_v43 }
 0x12e   :  { %656 = vmatprep.subr.mxu1 %v545_v14  ;;  %1366 = vmatmul.mubr.f32.gmra.mxu0 %v1890_v39 }
 0x12f   :  { %657 = vmatpush1.msra.mxu1 %v544_v59  ;;  %1368 = vmatprep.mubr.f32.mxu0 %v1894_v4 }
 0x130   :  { %658 = vmatprep.subr.mxu1 %v542_v13 }
 0x131   :  { %659 = vmatpush1.msra.mxu1 %v541_v54 }
 0x132   :  { %660 = vmatprep.subr.mxu1 %v539_v3  ;;  %1369 = vmatmul.mubr.f32.gmra.mxu0 %v70_v44 }
 0x133   :  { %661 = vmatpush1.msra.mxu1 %v538_v37  ;;  %1371 = vmatprep.mubr.f32.mxu0 %v71_v32 }
 0x134   :  { %662 = vmatprep.subr.mxu1 %v536_v26 }
 0x135   :  { %663 = vmatpush1.msra.mxu1 %v535_v58 }
 0x136   :  { %664 = vmatprep.subr.mxu1 %v533_v7  ;;  %1372 = vmatmul.mubr.f32.gmra.mxu0 %v72_v55 }
 0x137   :  { %665 = vmatpush1.msra.mxu1 %v532_v63  ;;  %1061 = vmatprep.mubr.f32.mxu0 %v1472_v0 }
 0x138   :  { %666 = vmatprep.subr.mxu1 %v530_v53 }
 0x139   :  { %667 = vmatpush1.msra.mxu1 %v529_v8 }
 0x13a   :  { %668 = vmatprep.subr.mxu1 %v527_v51 }
 0x13b   :  { %669 = vmatpush1.msra.mxu1 %v526_v60 }
 0x13c   :  { %703 = vmatmul.mubr.f32.vlgmr.msra.gmra.mxu1 %v1683_v46  ;;  %1374 = vmatprep.subr.mxu1 %v1472_v0  ;;  %v1944_v46 = vpop.permute.xlu0 %635 }
 0x13d   :  { %708 = vmatprep.mubr.f32.mxu1 %v1472_v0 }
 0x140   :  { %709 = vmatmul.mubr.f32.gmra.mxu1 %v1825_v28  ;;  %v1946_v47 = vpop.permute.xlu0 %623 }
 0x141   :  { %714 = vmatprep.mubr.f32.mxu1 %v1472_v0 }
 0x144   :  { %715 = vmatmul.mubr.f32.gmra.mxu1 %v1828_v56  ;;  %v1950_v52 = vpop.permute.xlu0 %615 }
 0x145   :  { %720 = vmatprep.mubr.f32.mxu1 %v1472_v0 }
 0x148   :  { %721 = vmatmul.mubr.f32.gmra.mxu1 %v1835_v5  ;;  %v90_v5 = vld [vmem:[%s2112_s2] sm:$0x1]  ;;  %s1478_s2 = smov [#allocation5]  }
 0x149   :  { %726 = vmatprep.mubr.f32.mxu1 %v1472_v0  ;;  %s1176_s19 = sshll.u32 %s1478_s2, 4  ;;  %s1177_s19 = int_to_ptr.vmem [resolvable:$true] %s1176_s19 }
 0x14a   :  { %s1445_s20 = scalar_lea.vmem %s1177_s19, 48  ;;  %s1449_s21 = scalar_lea.vmem %s1177_s19, 64 }
 0x14b   :  { %p1446_p5 = scmp.ne.s32.totalorder %s1177_s19, %s1445_s20  ;;  %p1450_p6 = scmp.lt.s32.totalorder %s1177_s19, %s1177_s19 }
 0x14c   :  { %727 = vmatmul.mubr.f32.gmra.mxu1 %v1838_v41  ;;  %v1476_v41 = vmov 2   ;;  %p1451_p7 = scmp.lt.s32.totalorder %s1449_s21, %s1445_s20 }
 0x14d   :  { %732 = vmatprep.mubr.f32.mxu1 %v1472_v0  ;;  %1423 = vset.pattern.permute.xlu1 %v1476_v41 }
 0x14e   :  { %994 = vperm.xlu1 %1423, %v90_v5   ;;  %1424 = vset.pattern.permute.xlu0 %v1476_v41  ;;  %p1452_p8 = por %p1451_p7, %p1450_p6 }
 0x150   :  { %733 = vmatmul.mubr.f32.gmra.mxu1 %v1848_v2  ;;  %p1453_p9 = pnand %p1452_p8, %p1446_p5 }
 0x151   :  { %738 = vmatprep.mubr.f32.mxu1 %v1472_v0 }
 0x154   :  { %739 = vmatmul.mubr.f32.gmra.mxu1 %v1852_v48  ;;  %v1962_v48 = vpop.permute.xlu0 %607 }
 0x155   :  { %744 = vmatprep.mubr.f32.mxu1 %v1472_v0 }
 0x158   :  { %745 = vmatmul.mubr.f32.gmra.mxu1 %v1862_v10  ;;  %v1968_v23 = vpop.permute.xlu0 %599  ;;  %v1970_v10 = vpop.permute.xlu1 %627 }
 0x159   :  { %750 = vmatprep.mubr.f32.mxu1 %v1472_v0 }
 0x15c   :  { %751 = vmatmul.mubr.f32.gmra.mxu1 %v1866_v50  ;;  %v1972_v50 = vpop.permute.xlu0 %591  ;;  %v1974_v38 = vpop.permute.xlu1 %619 }
 0x15d   :  { %756 = vmatprep.mubr.f32.mxu1 %v1472_v0 }
 0x160   :  { %757 = vmatmul.mubr.f32.gmra.mxu1 %v1876_v30  ;;  %v1976_v33 = vpop.permute.xlu0 %583  ;;  %v1978_v30 = vpop.permute.xlu1 %611 }
 0x161   :  { %762 = vmatprep.mubr.f32.mxu1 %v1472_v0 }
 0x164   :  { %763 = vmatmul.mubr.f32.gmra.mxu1 %v1880_v40  ;;  %v1984_v42 = vpop.permute.xlu0 %575 }
 0x165   :  { %768 = vmatprep.mubr.f32.mxu1 %v1472_v0 }
 0x168   :  { %769 = vmatmul.mubr.f32.gmra.mxu1 %v1890_v39 }
 0x169   :  { %774 = vmatprep.mubr.f32.mxu1 %v1472_v0 }
 0x16c   :  { %775 = vmatmul.mubr.f32.gmra.mxu1 %v1894_v4  ;;  %v1987_v4 = vpop.permute.xlu1 %603 }
 0x16d   :  { %780 = vmatprep.mubr.f32.mxu1 %v1472_v0 }
 0x170   :  { %781 = vmatmul.mubr.f32.gmra.mxu1 %v70_v44  ;;  %v2005_v26 = vpop.permute.xlu1 %595 }
 0x171   :  { %786 = vmatprep.mubr.f32.mxu1 %v1472_v0 }
 0x174   :  { %787 = vmatmul.mubr.f32.gmra.mxu1 %v71_v32  ;;  %v2019_v51 = vpop.permute.xlu1 %587 }
 0x175   :  { %792 = vmatprep.mubr.f32.mxu1 %v1472_v0 }
 0x178   :  { %793 = vmatmul.mubr.f32.gmra.mxu1 %v72_v55 }
 0x179   :  { %1406 = vmatprep.mubr.msk.f32.mxu1 %vm1475_vm1, %v1472_v0 }
 0x1da   :  { %v1948_v49 = vpop.f32.mrf.mxu0 }
 0x1dc   :  { %v1952_v28 = vpop.f32.mrf.mxu0 }
 0x1de   :  { %v1954_v56 = vpop.f32.mrf.mxu0 }
 0x1e0   :  { %v1960_v2 = vpop.f32.mrf.mxu0 }
 0x1e2   :  { %v1358_v12 = vpop.f32.mrf.mxu0 }
 0x1e3   :  { %v891_v53 = vadd.f32 %v1358_v12, %v2005_v26  ;;  %v881_v12 = vadd.f32 %v1954_v56, %v2019_v51 }
 0x1e4   :  { %v1966_v18 = vpop.f32.mrf.mxu0 }
 0x1e5   :  { %v886_v5 = vadd.f32 %v1966_v18, %v1972_v50 }
 0x1e6   :  { %v1361_v22 = vpop.f32.mrf.mxu0 }
 0x1e7   :  { %v901_v58 = vadd.f32 %v1361_v22, %v1987_v4  ;;  %v961_v22 = vmax.f32 %v891_v53, 0.0 }
 0x1e8   :  { %v895_v15 = vpop.f32.mrf.mxu0 }
 0x1e9   :  { %v896_v55 = vadd.f32 %v895_v15, %v1968_v23  ;;  %v967_v63 = vmax.f32 %v901_v58, 0.0 }
 0x1ea   :  { %v1364_v57 = vpop.f32.mrf.mxu0 }
 0x1eb   :  { %v911_v44 = vadd.f32 %v1364_v57, %v1978_v30  ;;  %v964_v60 = vmax.f32 %v896_v55, 0.0  ;;  %v958_v57 = vmax.f32 %v886_v5, 0.0 }
 0x1ec   :  { %v905_v27 = vpop.f32.mrf.mxu0 }
 0x1ed   :  { %v906_v37 = vadd.f32 %v905_v27, %v1962_v48  ;;  %v973_v16 = vmax.f32 %v911_v44, 0.0  ;;  %v876_v27 = vadd.f32 %v1960_v2, %v1976_v33  ;;  %v866_v2 = vadd.f32 %v1952_v28, %v1984_v42 }
 0x1ee   :  { %v1367_v20 = vpop.f32.mrf.mxu0 }
 0x1ef   :  { %v921_v14 = vadd.f32 %v1367_v20, %v1974_v38  ;;  %v970_v7 = vmax.f32 %v906_v37, 0.0  ;;  %v2036_v20 = vpop.permute.xlu1 %579 }
 0x1f0   :  { %v915_v34 = vpop.f32.mrf.mxu0  ;;  %v871_v56 = vadd.f32 %v1948_v49, %v2036_v20  ;;  %v946_v49 = vmax.f32 %v866_v2, 0.0 }
 0x1f1   :  { %v916_v13 = vadd.f32 %v915_v34, %v1950_v52  ;;  %v979_v3 = vmax.f32 %v921_v14, 0.0  ;;  %v955_v34 = vmax.f32 %v881_v12, 0.0 }
 0x1f2   :  { %v1370_v31 = vpop.f32.mrf.mxu0 }
 0x1f3   :  { %v931_v36 = vadd.f32 %v1370_v31, %v1970_v10  ;;  %v976_v32 = vmax.f32 %v916_v13, 0.0 }
 0x1f4   :  { %v925_v25 = vpop.f32.mrf.mxu0 }
 0x1f5   :  { %v926_v35 = vadd.f32 %v925_v25, %v1946_v47  ;;  %v985_v39 = vmax.f32 %v931_v36, 0.0  ;;  %v952_v25 = vmax.f32 %v876_v27, 0.0  ;;  %v949_v36 = vmax.f32 %v871_v56, 0.0 }
 0x1f6   :  { %v1373_v24 = vpop.f32.mrf.mxu0 }
 0x1f7   :  { %v941_v40 = vadd.f32 %v1373_v24, %v1944_v46  ;;  %v982_v6 = vmax.f32 %v926_v35, 0.0 }
 0x1f8   :  { %v935_v19 = vpop.f32.mrf.mxu0 }
 0x1f9   :  { %v991_v17 = vmax.f32 %v941_v40, 0.0  ;;  %v936_v43 = vadd.f32 %v935_v19, %v1964_v21 }
 0x1fb   :  { %v988_v11 = vmax.f32 %v936_v43, 0.0  ;;  %1375 = vmatpush3.msra.mxu1 %v991_v17  ;;  %v2058_v17 = vld [vmem:[#allocation2 + $0x100] sm:$0x1] }
 0x1fc   :  { %v704_v59 = vpop.f32.mrf.mxu1  ;;  %1376 = vmatprep.subr.mxu1 %v1472_v0 }
 0x1fd   :  { %v1990_v9 = vadd.f32 %v704_v59, %v1984_v42  ;;  %1377 = vmatpush3.msra.mxu1 %v988_v11 }
 0x1fe   :  { %v706_v54 = vpop.f32.mrf.mxu1  ;;  %1378 = vmatprep.subr.mxu1 %v1472_v0 }
 0x1ff   :  { %v1995_v62 = vadd.f32 %v706_v54, %v1984_v42  ;;  %1379 = vmatpush3.msra.mxu1 %v985_v39 }
 0x200   :  { %v1999_v1 = vpop.f32.mrf.mxu1  ;;  %1380 = vmatprep.subr.mxu1 %v1472_v0 }
 0x201   :  { %1381 = vmatpush3.msra.mxu1 %v982_v6 }
 0x202   :  { %v2003_v61 = vpop.f32.mrf.mxu1  ;;  %1382 = vmatprep.subr.mxu1 %v1472_v0 }
 0x203   :  { %1383 = vmatpush3.msra.mxu1 %v979_v3 }
 0x204   :  { %v2009_v45 = vpop.f32.mrf.mxu1  ;;  %1384 = vmatprep.subr.mxu1 %v1472_v0 }
 0x205   :  { %1385 = vmatpush3.msra.mxu1 %v976_v32 }
 0x206   :  { %v2013_v29 = vpop.f32.mrf.mxu1  ;;  %1386 = vmatprep.subr.mxu1 %v1472_v0 }
 0x207   :  { %1387 = vmatpush3.msra.mxu1 %v973_v16 }
 0x208   :  { %v2017_v8 = vpop.f32.mrf.mxu1  ;;  %1388 = vmatprep.subr.mxu1 %v1472_v0 }
 0x209   :  { %1389 = vmatpush3.msra.mxu1 %v970_v7 }
 0x20a   :  { %v2024_v41 = vpop.f32.mrf.mxu1  ;;  %1390 = vmatprep.subr.mxu1 %v1472_v0 }
 0x20b   :  { %1391 = vmatpush3.msra.mxu1 %v967_v63 }
 0x20c   :  { %v2029_v15 = vpop.f32.mrf.mxu1  ;;  %1392 = vmatprep.subr.mxu1 %v1472_v0 }
 0x20d   :  { %1393 = vmatpush3.msra.mxu1 %v964_v60 }
 0x20e   :  { %v2034_v18 = vpop.f32.mrf.mxu1  ;;  %1394 = vmatprep.subr.mxu1 %v1472_v0 }
 0x20f   :  { %1395 = vmatpush3.msra.mxu1 %v961_v22 }
 0x210   :  { %v2041_v31 = vpop.f32.mrf.mxu1  ;;  %1396 = vmatprep.subr.mxu1 %v1472_v0 }
 0x211   :  { %1397 = vmatpush3.msra.mxu1 %v958_v57 }
 0x212   :  { %v2046_v24 = vpop.f32.mrf.mxu1  ;;  %1398 = vmatprep.subr.mxu1 %v1472_v0 }
 0x213   :  { %1399 = vmatpush3.msra.mxu1 %v955_v34 }
 0x214   :  { %v2049_v40 = vpop.f32.mrf.mxu1  ;;  %1400 = vmatprep.subr.mxu1 %v1472_v0 }
 0x215   :  { %1401 = vmatpush3.msra.mxu1 %v952_v25 }
 0x216   :  { %v2052_v19 = vpop.f32.mrf.mxu1  ;;  %1402 = vmatprep.subr.mxu1 %v1472_v0 }
 0x217   :  { %1403 = vmatpush3.msra.mxu1 %v949_v36 }
 0x218   :  { %v2055_v35 = vpop.f32.mrf.mxu1  ;;  %1404 = vmatprep.subr.mxu1 %v1472_v0 }
 0x219   :  { %1405 = vmatpush3.msra.mxu1 %v946_v49 }
 0x21a   :  { %v748_v28 = vpop.f32.mrf.mxu1  ;;  %1407 = vmatmul.mubr.f32.vlgmr.msra.gmra.mxu1 %v2058_v17 }
 0x21c   :  { %v752_v43 = vpop.f32.mrf.mxu1 }
 0x21e   :  { %v754_v42 = vpop.f32.mrf.mxu1 }
 0x220   :  { %v758_v14 = vpop.f32.mrf.mxu1 }
 0x222   :  { %v760_v39 = vpop.f32.mrf.mxu1 }
 0x224   :  { %v764_v11 = vpop.f32.mrf.mxu1 }
 0x225   :  { %v765_v49 = vadd.f32 %v764_v11, %v1950_v52 }
 0x226   :  { %v766_v59 = vpop.f32.mrf.mxu1 }
 0x227   :  { %v767_v36 = vadd.f32 %v766_v59, %v1950_v52  ;;  %v753_v59 = vadd.f32 %v752_v43, %v1962_v48  ;;  %v749_v52 = vadd.f32 %v748_v28, %v1987_v4  ;;  %v737_v28 = vadd.f32 %v2046_v24, %v2005_v26 }
 0x228   :  { %v770_v13 = vpop.f32.mrf.mxu1  ;;  %v725_v24 = vadd.f32 %v2024_v41, %v2019_v51  ;;  %v713_v41 = vadd.f32 %v2003_v61, %v2036_v20  ;;  %v944_v61 = vmax.f32 %v1990_v9, 0.0 }
 0x229   :  { %v966_v43 = vmax.f32 %v749_v52, 0.0 }
 0x22a   :  { %v772_v6 = vpop.f32.mrf.mxu1 }
 0x22b   :  { %v773_v25 = vadd.f32 %v772_v6, %v1974_v38  ;;  %v759_v6 = vadd.f32 %v758_v14, %v1978_v30 }
 0x22c   :  { %v776_v54 = vpop.f32.mrf.mxu1 }
 0x22d   :  { %v777_v34 = vadd.f32 %v776_v54, %v1946_v47  ;;  %v978_v54 = vmax.f32 %v773_v25, 0.0 }
 0x22e   :  { %v778_v3 = vpop.f32.mrf.mxu1 }
 0x22f   :  { %v779_v57 = vadd.f32 %v778_v3, %v1946_v47  ;;  %v980_v3 = vmax.f32 %v777_v34, 0.0  ;;  %v761_v47 = vadd.f32 %v760_v39, %v1978_v30  ;;  %v747_v39 = vadd.f32 %v2055_v35, %v1987_v4 }
 0x230   :  { %v782_v44 = vpop.f32.mrf.mxu1  ;;  %v743_v30 = vadd.f32 %v2052_v19, %v1968_v23  ;;  %v735_v4 = vadd.f32 %v2041_v31, %v2005_v26  ;;  %v731_v19 = vadd.f32 %v2034_v18, %v1972_v50  ;;  %v723_v26 = vadd.f32 %v2017_v8, %v2019_v51 }
 0x231   :  { %v783_v22 = vadd.f32 %v782_v44, %v1970_v10  ;;  %v972_v11 = vmax.f32 %v761_v47, 0.0  ;;  %v965_v35 = vmax.f32 %v747_v39, 0.0  ;;  %v719_v18 = vadd.f32 %v2013_v29, %v1976_v33 }
 0x232   :  { %v784_v37 = vpop.f32.mrf.mxu1  ;;  %v959_v31 = vmax.f32 %v735_v4, 0.0  ;;  %v711_v8 = vadd.f32 %v1999_v1, %v2036_v20  ;;  %v953_v51 = vmax.f32 %v723_v26, 0.0  ;;  %v1477_v20 = vmov 1966171168  }
 0x233   :  { %v785_v60 = vadd.f32 %v784_v37, %v1970_v10  ;;  %v981_v10 = vmax.f32 %v779_v57, 0.0  ;;  %v974_v37 = vmax.f32 %v765_v49, 0.0 }
 0x234   :  { %v788_v32 = vpop.f32.mrf.mxu1 }
 0x235   :  { %v789_v53 = vadd.f32 %v788_v32, %v1964_v21  ;;  %v984_v2 = vmax.f32 %v785_v60, 0.0  ;;  %v971_v32 = vmax.f32 %v759_v6, 0.0  ;;  %v1143_v60 = vunpack.c.l.s4 %v1477_v20 }
 0x236   :  { %v790_v0 = vpop.f32.mrf.mxu1 }
 0x237   :  { %v791_v55 = vadd.f32 %v790_v0, %v1964_v21  ;;  %v986_v56 = vmax.f32 %v789_v53, 0.0  ;;  %v983_v21 = vmax.f32 %v783_v22, 0.0  ;;  %v963_v0 = vmax.f32 %v743_v30, 0.0 }
 0x238   :  { %v794_v16 = vpop.f32.mrf.mxu1  ;;  %v947_v53 = vmax.f32 %v711_v8, 0.0  ;;  %v1144_v22 = vunpack.c.0.s8 %v1143_v60 }
 0x239   :  { %v795_v58 = vadd.f32 %v794_v16, %v1944_v46  ;;  %v987_v27 = vmax.f32 %v791_v55, 0.0  ;;  %v960_v16 = vmax.f32 %v737_v28, 0.0  ;;  %v951_v55 = vmax.f32 %v719_v18, 0.0 }
 0x23a   :  { %v796_v7 = vpop.f32.mrf.mxu1 }
 0x23b   :  { %v797_v63 = vadd.f32 %v796_v7, %v1944_v46  ;;  %v989_v12 = vmax.f32 %v795_v58, 0.0  ;;  %v771_v46 = vadd.f32 %v770_v13, %v1974_v38  ;;  %v755_v38 = vadd.f32 %v754_v42, %v1962_v48 }
 0x23c   :  { %v975_v13 = vmax.f32 %v767_v36, 0.0  ;;  %v741_v42 = vadd.f32 %v2049_v40, %v1968_v23  ;;  %v968_v48 = vmax.f32 %v753_v59, 0.0  ;;  %v729_v23 = vadd.f32 %v2029_v15, %v1972_v50 }
 0x23d   :  { %v990_v5 = vmax.f32 %v797_v63, 0.0  ;;  %v977_v44 = vmax.f32 %v771_v46, 0.0  ;;  %v969_v14 = vmax.f32 %v755_v38, 0.0  ;;  %v957_v58 = vmax.f32 %v731_v19, 0.0 }
 0x23e   :  { %v962_v40 = vmax.f32 %v741_v42, 0.0  ;;  %v717_v50 = vadd.f32 %v2009_v45, %v1976_v33  ;;  %v956_v15 = vmax.f32 %v729_v23, 0.0  ;;  %v954_v7 = vmax.f32 %v725_v24, 0.0 }
 0x23f   :  { %997 = vmatprep.subr.mxu0 %v990_v5  ;;  %v948_v63 = vmax.f32 %v713_v41, 0.0  ;;  %v945_v33 = vmax.f32 %v1995_v62, 0.0  ;;  %v1145_v5 = vlaneseq }
 0x240   :  { %998 = vmatpush1.msra.mxu0 %v989_v12  ;;  %v950_v29 = vmax.f32 %v717_v50, 0.0 }
 0x241   :  { %999 = vmatprep.subr.mxu0 %v987_v27  ;;  %v1146_v12 = vshrl.u32 %v1145_v5, 7  ;;  %v995_v27 = vpop.permute.xlu1 %994  ;;  %vm1167_vm2 = vcmp.lt.s32.totalorder %v1145_v5, 384 }
 0x242   :  { %1000 = vmatpush1.msra.mxu0 %v986_v56 }
 0x243   :  { %1001 = vmatprep.subr.mxu0 %v984_v2  ;;  %v1147_v25 = vsub.s32 %v1144_v22, %v1146_v12 }
 0x244   :  { %1002 = vmatpush1.msra.mxu0 %v983_v21 }
 0x245   :  { %1003 = vmatprep.subr.mxu0 %v981_v10 }
 0x246   :  { %1004 = vmatpush1.msra.mxu0 %v980_v3 }
 0x247   :  { %1005 = vmatprep.subr.mxu0 %v978_v54 }
 0x248   :  { %1006 = vmatpush1.msra.mxu0 %v977_v44 }
 0x249   :  { %1007 = vmatprep.subr.mxu0 %v975_v13 }
 0x24a   :  { %1008 = vmatpush1.msra.mxu0 %v974_v37 }
 0x24b   :  { %1009 = vmatprep.subr.mxu0 %v972_v11 }
 0x24c   :  { %1010 = vmatpush1.msra.mxu0 %v971_v32 }
 0x24d   :  { %1011 = vmatprep.subr.mxu0 %v969_v14 }
 0x24e   :  { %1012 = vmatpush1.msra.mxu0 %v968_v48 }
 0x24f   :  { %1013 = vmatprep.subr.mxu0 %v966_v43 }
 0x250   :  { %1014 = vmatpush1.msra.mxu0 %v965_v35 }
 0x251   :  { %1015 = vmatprep.subr.mxu0 %v963_v0 }
 0x252   :  { %1016 = vmatpush1.msra.mxu0 %v962_v40 }
 0x253   :  { %1017 = vmatprep.subr.mxu0 %v960_v16 }
 0x254   :  { %1018 = vmatpush1.msra.mxu0 %v959_v31 }
 0x255   :  { %1019 = vmatprep.subr.mxu0 %v957_v58 }
 0x256   :  { %1020 = vmatpush1.msra.mxu0 %v956_v15 }
 0x257   :  { %1021 = vmatprep.subr.mxu0 %v954_v7 }
 0x258   :  { %1022 = vmatpush1.msra.mxu0 %v953_v51 }
 0x259   :  { %1023 = vmatprep.subr.mxu0 %v951_v55 }
 0x25a   :  { %1024 = vmatpush1.msra.mxu0 %v950_v29 }
 0x25b   :  { %1025 = vmatprep.subr.mxu0 %v948_v63 }
 0x25c   :  { %1026 = vmatpush1.msra.mxu0 %v947_v53 }
 0x25d   :  { %1027 = vmatprep.subr.mxu0 %v945_v33 }
 0x25e   :  { %1028 = vmatpush1.msra.mxu0 %v944_v61 }
 0x25f   :  { %1062 = vmatmul.mubr.f32.vlgmr.msra.gmra.mxu0 %v2058_v17 }
 0x2da   :  { %v1134_v1 = vpop.f32.mrf.mxu1 }
 0x2db   :  { %v1135_v2 = vadd.f32 %v1134_v1, %v995_v27 }
 0x2dc   :  { %v1408_v45 = vpop.f32.mrf.mxu1 }
 0x2dd   :  { %v1155_v21 = vrot.slane %v1135_v2, %v1147_v25 }
 0x31f   :  { %v1063_v57 = vpop.f32.mrf.mxu0 }
 0x320   :  { %v1064_v56 = vadd.f32 %v1063_v57, %v995_v27 }
 0x321   :  { %v1065_v34 = vpop.f32.mrf.mxu0 }
 0x322   :  { %v1066_v62 = vadd.f32 %v1065_v34, %v995_v27 }
 0x324   :  { %v1141_v9 = vcombine.low %v1064_v56, %v1066_v62 }
 0x326   :  { %v1148_v46 = vrot.slane %v1141_v9, %v1147_v25 }
 0x328   :  { %v1156_v17 = vcombine.low %v1148_v46, %v1155_v21 }
 0x32a   :  { %v1163_v36 = vrot.slane %v1156_v17, %v1147_v25 }
 0x32c   :  { %1169 = vst.msk [vmem:[#allocation5] sm:$0x7] %vm1167_vm2, %v1163_v36 }
 0x32d   :  { %1456 = shalt.err (!%p1453_p9)
}
 0x32e   :  { %1179 = dma.vmem_to_hbm [thread:$0]  %s1177_s19, 48, %s2113_s3, [#allocation4]  }
 0x32f   :  { %1467 = dma.done.wait [#allocation4], 48  }
 0x330   :  { %1468 = vsyncadd [#allocation4], 4294967248 }
 0x331   :  { %1183 = vsyncpa [#allocation3], 1 }
 0x332   :  { %1184 = vsyncpa [#allocation4], 1 }

</bundles_post_ra>
